<compile_context>
chip_gen: v7x
topology: tpu7x:2x2x1
jax: 0.10.0
libtpu: 0.0.40
codegen_flags: <defaults>
</compile_context>

<pallas_src>
import functools
import math

import jax
import jax.numpy as jnp
from jax.experimental import pallas as pl
from jax.experimental.pallas import tpu as pltpu

S_DEFAULT = 64.0
M_DEFAULT = 0.5


def _arcface_kernel(c_total, c_ragged, s, cos_m, sin_m,
                    labels_ref, logits_ref, loss_ref,
                    m_scr, l_scr, pos_scr):
    """One (TB, TC) tile of the margin-modified, scaled cross-entropy.

    labels_ref : (TB, 1)  i32       class index per row
    logits_ref : (TB, TC) any-float cosine logits (native dtype, upcast here)
    loss_ref   : (TB, 1)  f32       per-row loss (written at the last C step)
    m_scr / l_scr / pos_scr : (TB, 1) f32 running max / running exp-sum /
                              scaled margin-modified positive logit.
    """
    c = pl.program_id(1)
    n_c = pl.num_programs(1)

    @pl.when(c == 0)
    def _init():
        m_scr[...] = jnp.full_like(m_scr, -jnp.inf)
        l_scr[...] = jnp.zeros_like(l_scr)
        pos_scr[...] = jnp.zeros_like(pos_scr)

    x = logits_ref[...].astype(jnp.float32)          # native-dtype DMA, f32 math
    tb, tc = x.shape
    labels = labels_ref[...]                         # (TB, 1) i32

    col = jax.lax.broadcasted_iota(jnp.int32, (tb, tc), 1)
    if c_ragged:  # static flag: only emitted when C % TC != 0 (last tile mask)
        x = jnp.where(col < (c_total - c * tc), x, -jnp.inf)

    local_label = labels - c * tc                    # (TB, 1)
    in_tile = jnp.logical_and(local_label >= 0, local_label < tc)
    onehot = col == local_label                      # (TB, TC)

    # Positive-logit extraction + margin math (margin math is (TB,1)-sized).
    pos = jnp.sum(jnp.where(onehot, x, 0.0), axis=1, keepdims=True)
    p = jnp.clip(pos, -0.999, 0.999)
    # cos(clip(acos(p) + m, 0, pi)) without acos (see header comment).
    inner = p * cos_m - jnp.sqrt(jnp.maximum(1.0 - p * p, 0.0)) * sin_m
    new_pos = jnp.where(p < -cos_m, -1.0, inner)
    pos_scr[...] = jnp.where(in_tile, new_pos * s, pos_scr[...])

    # Margin-substituted, scaled logits for this tile.
    scaled = jnp.where(onehot, new_pos, x) * s

    # Online softmax accumulation across C tiles.
    m_prev = m_scr[...]
    m_new = jnp.maximum(m_prev, jnp.max(scaled, axis=1, keepdims=True))
    l_scr[...] = (jnp.exp(m_prev - m_new) * l_scr[...]
                  + jnp.sum(jnp.exp(scaled - m_new), axis=1, keepdims=True))
    m_scr[...] = m_new

    @pl.when(c == n_c - 1)
    def _finalize():
        loss_ref[...] = m_scr[...] + jnp.log(l_scr[...]) - pos_scr[...]


def _pick_b_tile(b, pref):
    """TB: multiple of 8 dividing b, <= pref; prefer >= 2 (even) B tiles so the
    'parallel' grid axis can be sharded across both v7x TensorCores."""
    pref = max(8, (pref // 8) * 8)
    if b % 8 != 0:
        return b                                     # single full-B tile
    divisors = [t for t in range(8, b + 1, 8) if b % t == 0]
    for pred in (
        lambda t: t <= pref and (b // t) >= 2 and (b // t) % 2 == 0,
        lambda t: t <= pref and (b // t) >= 2,
        lambda t: t <= pref,
    ):
        cands = [t for t in divisors if pred(t)]
        if cands:
            return max(cands)
    return b


def _vmem_capacity_bytes(default=64 * 1024 * 1024):
    """Per-core VMEM capacity; falls back to a v7x-safe default."""
    try:
        info = pltpu.get_tpu_info()
        for attr in ("vmem_capacity_bytes", "vmem_bytes", "vmem_size_bytes"):
            v = getattr(info, attr, None)
            if v:
                return int(v)
    except Exception:
        pass
    return default


def arcface_loss(logits, norms, labels, *, s=S_DEFAULT, m=M_DEFAULT,
                 tb=256, tc=None, logit_buffers=None, vmem_limit_bytes=None):
    """ArcFace forward: returns the mean cross-entropy loss (the module's
    return value).  `norms` is accepted for signature parity but is unused,
    exactly as in the reference PyTorch module.

    Fast path: pass bf16 cosine `logits` (kept bf16 in HBM, upcast in-kernel);
    the kernel is HBM-bound, so halving streamed bytes is ~2x on v5e/v6e.
    """
    del norms
    B, C = logits.shape
    itemsize = jnp.dtype(logits.dtype).itemsize

    TB = _pick_b_tile(B, tb)
    n_b = B // TB

    if vmem_limit_bytes is None:
        cap = _vmem_capacity_bytes()
        vmem_limit_bytes = max(32 * 1024 * 1024,
                               min(int(cap * 0.7), 128 * 1024 * 1024))
    n_buf = 2 if logit_buffers is None else max(2, int(logit_buffers))

    # Keep the logits multi-buffer at or below ~half the scoped VMEM limit.
    max_tc = (vmem_limit_bytes // 2) // (n_buf * TB * itemsize)
    max_tc = max(128, (max_tc // 128) * 128)
    req_tc = 8192 if tc is None else tc
    req_tc = max(128, (req_tc // 128) * 128)
    req_tc = min(req_tc, max_tc)
    TC = C if C <= req_tc else req_tc
    c_ragged = (C % TC) != 0
    n_c = pl.cdiv(C, TC)

    kernel = functools.partial(_arcface_kernel, C, c_ragged,
                               float(s), math.cos(m), math.sin(m))

    cost = pl.CostEstimate(
        flops=int(8 * B * C),
        transcendentals=int(B * C),
        bytes_accessed=int(B * C * itemsize + 8 * B),
    )

    logits_spec_kwargs = {}
    if logit_buffers is not None and int(logit_buffers) != 2:
        logits_spec_kwargs["pipeline_mode"] = pl.Buffered(int(logit_buffers))
    logits_spec = pl.BlockSpec((TB, TC), lambda b, c: (b, c),
                               **logits_spec_kwargs)

    per_row = pl.pallas_call(
        kernel,
        out_shape=jax.ShapeDtypeStruct((B, 1), jnp.float32),
        grid=(n_b, n_c),
        in_specs=[
            pl.BlockSpec((TB, 1), lambda b, c: (b, 0)),    # labels
            logits_spec,                                   # logits (native dtype)
        ],
        out_specs=pl.BlockSpec((TB, 1), lambda b, c: (b, 0)),
        scratch_shapes=[pltpu.VMEM((TB, 1), jnp.float32)] * 3,
        compiler_params=pltpu.CompilerParams(
            dimension_semantics=("parallel", "arbitrary"),
            vmem_limit_bytes=int(vmem_limit_bytes),
        ),
        cost_estimate=cost,
    )(labels.reshape(B, 1).astype(jnp.int32), logits)

    return jnp.mean(per_row)                          # F.cross_entropy mean


def arcface_ref(logits, norms, labels, s=S_DEFAULT, m=M_DEFAULT):
    """Pure-JAX reference matching the PyTorch forward literally."""
    del norms
    logits = logits.astype(jnp.float32)
    B = logits.shape[0]
    rows = jnp.arange(B)
    pos = logits[rows, labels]
    theta = jnp.arccos(jnp.clip(pos, -0.999, 0.999)) + m
    new_pos = jnp.cos(jnp.clip(theta, 0.0, math.pi))
    mod = logits.at[rows, labels].set(new_pos)
    scaled = mod * s
    lse = jax.scipy.special.logsumexp(scaled, axis=1)
    return jnp.mean(lse - scaled[rows, labels])


def _check(a, b, tag):
    assert abs(float(a) - float(b)) < 1e-3 * (1.0 + abs(float(b))), (
        tag, float(a), float(b))


if __name__ == "__main__":
    key = jax.random.PRNGKey(0)
    k1, k2, k3 = jax.random.split(key, 3)

    # Small but representative shapes: exercises both grid axes (2 B-tiles x
    # 4 C-tiles with tb=8, tc=128) and the online-softmax accumulation.
    B, C = 16, 512
    logits = jax.random.uniform(k1, (B, C), jnp.float32, -1.0, 1.0)  # cosine sims
    norms = jax.random.uniform(k2, (B,), jnp.float32, 5.0, 40.0)     # unused
    labels = jax.random.randint(k3, (B,), 0, C, dtype=jnp.int32)

    loss = jax.block_until_ready(arcface_loss(logits, norms, labels, tb=8, tc=128))
    _check(loss, arcface_ref(logits, norms, labels), "tiled f32")

    # Ragged class count: last C tile is partially out of bounds, masked with
    # -inf in-kernel before max/exp/sum.
    C2 = 500
    logits2 = jax.random.uniform(k1, (B, C2), jnp.float32, -1.0, 1.0)
    labels2 = jax.random.randint(k3, (B,), 0, C2, dtype=jnp.int32)
    loss2 = jax.block_until_ready(arcface_loss(logits2, norms, labels2, tb=8, tc=128))
    _check(loss2, arcface_ref(logits2, norms, labels2), "ragged f32")

    # Auto (generation-aware) tiling path: single C tile, default VMEM limit.
    loss3 = jax.block_until_ready(arcface_loss(logits, norms, labels))
    _check(loss3, arcface_ref(logits, norms, labels), "auto f32")

    # bf16 fast path: native-dtype DMA, f32 math in-kernel.
    logits_bf16 = logits.astype(jnp.bfloat16)
    loss4 = jax.block_until_ready(arcface_loss(logits_bf16, norms, labels,
                                               tb=8, tc=128))
    _check(loss4, arcface_ref(logits_bf16, norms, labels), "bf16")

    print("KERNEL_OK")
</pallas_src>

<mosaic_0001>
module attributes {stable_mosaic.version = 11 : i64} {
  func.func @_arcface_kernel(%arg0: i32, %arg1: i32, %arg2: memref<8x1xi32, #tpu.memory_space<vmem>>, %arg3: memref<8x128xf32, #tpu.memory_space<vmem>>, %arg4: memref<8x1xf32, #tpu.memory_space<vmem>>, %arg5: memref<8x1xf32, #tpu.memory_space<vmem>>, %arg6: memref<8x1xf32, #tpu.memory_space<vmem>>, %arg7: memref<8x1xf32, #tpu.memory_space<vmem>>) attributes {dimension_semantics = [#tpu.dimension_semantics<parallel>, #tpu.dimension_semantics<arbitrary>], iteration_bounds = array<i64: 2, 4>, scalar_prefetch = 0 : i64, scratch_operands = 3 : i64, tpu.core_type = #tpu.core_type<tc>, window_params = [{transform_indices = @transform_0, window_bounds = array<i64: 8, 1>}, {transform_indices = @transform_1, window_bounds = array<i64: 8, 128>}, {transform_indices = @transform_2, window_bounds = array<i64: 8, 1>}]} {
    %c0_i32 = arith.constant 0 : i32
    %0 = arith.cmpi eq, %arg1, %c0_i32 : i32
    %1 = arith.extui %0 : i1 to i32
    %c0_i32_0 = arith.constant 0 : i32
    %2 = arith.cmpi ne, %1, %c0_i32_0 : i32
    scf.if %2 {
      %cst_32 = arith.constant 0xFF800000 : f32
      %68 = vector.broadcast %cst_32 : f32 to vector<8x1xf32>
      %c0_33 = arith.constant 0 : index
      %c0_34 = arith.constant 0 : index
      %69 = vector.load %arg5[%c0_33, %c0_34] : memref<8x1xf32, #tpu.memory_space<vmem>>, vector<8x1xf32>
      tpu.vector_store %arg5[%c0_33, %c0_34], %68 {strides = array<i32>} : memref<8x1xf32, #tpu.memory_space<vmem>>, vector<8x1xf32>,
      %cst_35 = arith.constant 0.000000e+00 : f32
      %70 = vector.broadcast %cst_35 : f32 to vector<8x1xf32>
      %c0_36 = arith.constant 0 : index
      %c0_37 = arith.constant 0 : index
      %71 = vector.load %arg6[%c0_36, %c0_37] : memref<8x1xf32, #tpu.memory_space<vmem>>, vector<8x1xf32>
      tpu.vector_store %arg6[%c0_36, %c0_37], %70 {strides = array<i32>} : memref<8x1xf32, #tpu.memory_space<vmem>>, vector<8x1xf32>,
      %cst_38 = arith.constant 0.000000e+00 : f32
      %72 = vector.broadcast %cst_38 : f32 to vector<8x1xf32>
      %c0_39 = arith.constant 0 : index
      %c0_40 = arith.constant 0 : index
      %73 = vector.load %arg7[%c0_39, %c0_40] : memref<8x1xf32, #tpu.memory_space<vmem>>, vector<8x1xf32>
      tpu.vector_store %arg7[%c0_39, %c0_40], %72 {strides = array<i32>} : memref<8x1xf32, #tpu.memory_space<vmem>>, vector<8x1xf32>,
    } else {
    }
    %c0 = arith.constant 0 : index
    %c0_1 = arith.constant 0 : index
    %3 = vector.load %arg3[%c0, %c0_1] : memref<8x128xf32, #tpu.memory_space<vmem>>, vector<8x128xf32>
    %c0_2 = arith.constant 0 : index
    %c0_3 = arith.constant 0 : index
    %4 = vector.load %arg2[%c0_2, %c0_3] : memref<8x1xi32, #tpu.memory_space<vmem>>, vector<8x1xi32>
    %5 = tpu.iota {dimensions = array<i32: 1>} : vector<8x128xi32>
    %c128_i32 = arith.constant 128 : i32
    %6 = arith.muli %arg1, %c128_i32 : i32
    %7 = vector.broadcast %6 : i32 to vector<8x1xi32>
    %8 = arith.subi %4, %7 : vector<8x1xi32>
    %c0_i32_4 = arith.constant 0 : i32
    %9 = vector.broadcast %c0_i32_4 : i32 to vector<8x1xi32>
    %10 = arith.cmpi sge, %8, %9 : vector<8x1xi32>
    %c128_i32_5 = arith.constant 128 : i32
    %11 = vector.broadcast %c128_i32_5 : i32 to vector<8x1xi32>
    %12 = arith.cmpi slt, %8, %11 : vector<8x1xi32>
    %13 = arith.andi %10, %12 : vector<8x1xi1>
    %14 = vector.broadcast %8 : vector<8x1xi32> to vector<8x128xi32>
    %15 = arith.cmpi eq, %5, %14 : vector<8x128xi32>
    %cst = arith.constant 0.000000e+00 : f32
    %16 = vector.broadcast %cst : f32 to vector<8x128xf32>
    %17 = arith.select %15, %3, %16 : vector<8x128xi1>, vector<8x128xf32>
    %cst_6 = arith.constant dense<0.000000e+00> : vector<8xf32>
    %18 = vector.multi_reduction <add>, %17, %cst_6 [1] : vector<8x128xf32> to vector<8xf32>
    %19 = vector.shape_cast %18 : vector<8xf32> to vector<8x1xf32>
    %cst_7 = arith.constant -9.990000e-01 : f32
    %cst_8 = arith.constant 9.990000e-01 : f32
    %20 = vector.broadcast %cst_7 : f32 to vector<8x1xf32>
    %21 = arith.maximumf %20, %19 : vector<8x1xf32>
    %22 = vector.broadcast %cst_8 : f32 to vector<8x1xf32>
    %23 = arith.minimumf %22, %21 : vector<8x1xf32>
    %cst_9 = arith.constant 0.87758255 : f32
    %24 = vector.broadcast %cst_9 : f32 to vector<8x1xf32>
    %25 = arith.mulf %23, %24 : vector<8x1xf32>
    %26 = arith.mulf %23, %23 : vector<8x1xf32>
    %cst_10 = arith.constant 1.000000e+00 : f32
    %27 = vector.broadcast %cst_10 : f32 to vector<8x1xf32>
    %28 = arith.subf %27, %26 : vector<8x1xf32>
    %cst_11 = arith.constant 0.000000e+00 : f32
    %29 = vector.broadcast %cst_11 : f32 to vector<8x1xf32>
    %30 = arith.maximumf %28, %29 : vector<8x1xf32>
    %31 = math.sqrt %30 : vector<8x1xf32>
    %cst_12 = arith.constant 0.47942555 : f32
    %32 = vector.broadcast %cst_12 : f32 to vector<8x1xf32>
    %33 = arith.mulf %31, %32 : vector<8x1xf32>
    %34 = arith.subf %25, %33 : vector<8x1xf32>
    %cst_13 = arith.constant -0.87758255 : f32
    %35 = vector.broadcast %cst_13 : f32 to vector<8x1xf32>
    %36 = arith.cmpf olt, %23, %35 : vector<8x1xf32>
    %cst_14 = arith.constant -1.000000e+00 : f32
    %37 = vector.broadcast %cst_14 : f32 to vector<8x1xf32>
    %38 = arith.select %36, %37, %34 : vector<8x1xi1>, vector<8x1xf32>
    %cst_15 = arith.constant 6.400000e+01 : f32
    %39 = vector.broadcast %cst_15 : f32 to vector<8x1xf32>
    %40 = arith.mulf %38, %39 : vector<8x1xf32>
    %c0_16 = arith.constant 0 : index
    %c0_17 = arith.constant 0 : index
    %41 = vector.load %arg7[%c0_16, %c0_17] : memref<8x1xf32, #tpu.memory_space<vmem>>, vector<8x1xf32>
    %42 = arith.select %13, %40, %41 : vector<8x1xi1>, vector<8x1xf32>
    %c0_18 = arith.constant 0 : index
    %c0_19 = arith.constant 0 : index
    %43 = vector.load %arg7[%c0_18, %c0_19] : memref<8x1xf32, #tpu.memory_space<vmem>>, vector<8x1xf32>
    tpu.vector_store %arg7[%c0_18, %c0_19], %42 {strides = array<i32>} : memref<8x1xf32, #tpu.memory_space<vmem>>, vector<8x1xf32>,
    %44 = vector.shape_cast %38 : vector<8x1xf32> to vector<8x1xf32>
    %45 = vector.broadcast %44 : vector<8x1xf32> to vector<8x128xf32>
    %46 = arith.select %15, %45, %3 : vector<8x128xi1>, vector<8x128xf32>
    %cst_20 = arith.constant 6.400000e+01 : f32
    %47 = vector.broadcast %cst_20 : f32 to vector<8x128xf32>
    %48 = arith.mulf %46, %47 : vector<8x128xf32>
    %c0_21 = arith.constant 0 : index
    %c0_22 = arith.constant 0 : index
    %49 = vector.load %arg5[%c0_21, %c0_22] : memref<8x1xf32, #tpu.memory_space<vmem>>, vector<8x1xf32>
    %cst_23 = arith.constant dense<0xFF800000> : vector<8xf32>
    %50 = vector.multi_reduction <maximumf>, %48, %cst_23 [1] : vector<8x128xf32> to vector<8xf32>
    %51 = vector.shape_cast %50 : vector<8xf32> to vector<8x1xf32>
    %52 = arith.maximumf %49, %51 : vector<8x1xf32>
    %53 = arith.subf %49, %52 : vector<8x1xf32>
    %54 = math.exp %53 : vector<8x1xf32>
    %c0_24 = arith.constant 0 : index
    %c0_25 = arith.constant 0 : index
    %55 = vector.load %arg6[%c0_24, %c0_25] : memref<8x1xf32, #tpu.memory_space<vmem>>, vector<8x1xf32>
    %56 = arith.mulf %54, %55 : vector<8x1xf32>
    %57 = vector.broadcast %52 : vector<8x1xf32> to vector<8x128xf32>
    %58 = arith.subf %48, %57 : vector<8x128xf32>
    %59 = math.exp %58 : vector<8x128xf32>
    %cst_26 = arith.constant dense<0.000000e+00> : vector<8xf32>
    %60 = vector.multi_reduction <add>, %59, %cst_26 [1] : vector<8x128xf32> to vector<8xf32>
    %61 = vector.shape_cast %60 : vector<8xf32> to vector<8x1xf32>
    %62 = arith.addf %56, %61 : vector<8x1xf32>
    %c0_27 = arith.constant 0 : index
    %c0_28 = arith.constant 0 : index
    %63 = vector.load %arg6[%c0_27, %c0_28] : memref<8x1xf32, #tpu.memory_space<vmem>>, vector<8x1xf32>
    tpu.vector_store %arg6[%c0_27, %c0_28], %62 {strides = array<i32>} : memref<8x1xf32, #tpu.memory_space<vmem>>, vector<8x1xf32>,
    %c0_29 = arith.constant 0 : index
    %c0_30 = arith.constant 0 : index
    %64 = vector.load %arg5[%c0_29, %c0_30] : memref<8x1xf32, #tpu.memory_space<vmem>>, vector<8x1xf32>
    tpu.vector_store %arg5[%c0_29, %c0_30], %52 {strides = array<i32>} : memref<8x1xf32, #tpu.memory_space<vmem>>, vector<8x1xf32>,
    %c3_i32 = arith.constant 3 : i32
    %65 = arith.cmpi eq, %arg1, %c3_i32 : i32
    %66 = arith.extui %65 : i1 to i32
    %c0_i32_31 = arith.constant 0 : i32
    %67 = arith.cmpi ne, %66, %c0_i32_31 : i32
    scf.if %67 {
      %c0_32 = arith.constant 0 : index
      %c0_33 = arith.constant 0 : index
      %68 = vector.load %arg5[%c0_32, %c0_33] : memref<8x1xf32, #tpu.memory_space<vmem>>, vector<8x1xf32>
      %c0_34 = arith.constant 0 : index
      %c0_35 = arith.constant 0 : index
      %69 = vector.load %arg6[%c0_34, %c0_35] : memref<8x1xf32, #tpu.memory_space<vmem>>, vector<8x1xf32>
      %70 = math.log %69 : vector<8x1xf32>
      %71 = arith.addf %68, %70 : vector<8x1xf32>
      %c0_36 = arith.constant 0 : index
      %c0_37 = arith.constant 0 : index
      %72 = vector.load %arg7[%c0_36, %c0_37] : memref<8x1xf32, #tpu.memory_space<vmem>>, vector<8x1xf32>
      %73 = arith.subf %71, %72 : vector<8x1xf32>
      %c0_38 = arith.constant 0 : index
      %c0_39 = arith.constant 0 : index
      %74 = vector.load %arg4[%c0_38, %c0_39] : memref<8x1xf32, #tpu.memory_space<vmem>>, vector<8x1xf32>
      tpu.vector_store %arg4[%c0_38, %c0_39], %73 {strides = array<i32>} : memref<8x1xf32, #tpu.memory_space<vmem>>, vector<8x1xf32>,
    } else {
    }
    return
  }
  func.func @transform_0(%arg0: i32, %arg1: i32) -> (i32, i32) {
    %c0_i32 = arith.constant 0 : i32
    %c0_i32_0 = arith.constant 0 : i32
    return %arg0, %c0_i32 : i32, i32
  }
  func.func @transform_1(%arg0: i32, %arg1: i32) -> (i32, i32) {
    %c0_i32 = arith.constant 0 : i32
    return %arg0, %arg1 : i32, i32
  }
  func.func @transform_2(%arg0: i32, %arg1: i32) -> (i32, i32) {
    %c0_i32 = arith.constant 0 : i32
    %c0_i32_0 = arith.constant 0 : i32
    return %arg0, %c0_i32 : i32, i32
  }
}

</mosaic_0001>

<bundles_post_ra>
// kernel: tpu_custom_call.1
= control target key start
LH: loop header
LB: loop body
LE: loop exit
PB: predicated region body
PF: predicated region fallthrough
CT: control target
= control target key end

     0   :  { %7 = vsyncpa [#allocation6], 0  ;;  %s751_s0 = inlined_call_operand.vmem [shape: s32[16,1], index: 0, kind: input, shape index: {}]   ;;  %s752_s1 = inlined_call_operand.hbm [shape: f32[16,512], index: 1, kind: input, shape index: {}]   ;;  %s753_s2 = inlined_call_operand.vmem [shape: f32[16,1], index: 2, kind: output, shape index: {}]  }
   0x1   :  { %9 = vsyncpa [#allocation6 + $0x1], 0  ;;  %s583_s9 = smov 0   ;;  %s585_s10 = smov 0  }
   0x2   :  { %s587_s11 = smov 0   ;;  %s589_s12 = smov 0  }
   0x3   :  { %s591_s13 = smov 0   ;;  %s593_s14 = smov 0  }
   0x4   :  { %s595_s15 = smov 0   ;;  %s597_s16 = smov 0  }
   0x5 LB: > { %s365_s17 = sadd.s32 4294967295, %s562_s16   ;;  %s24_s18 = sadd.s32 1, %s554_s14  ;;  %s562_s16 = sphi %s597_s16, %s15_s16   ;;  %s558_s15 = sphi %s595_s15, %s765_s15   ;;  %s554_s14 = sphi %s593_s14, %s764_s14   ;;  %s550_s13 = sphi %s591_s13, %s763_s13   ;;  %s546_s12 = sphi %s589_s12, %s762_s12   ;;  %s542_s11 = sphi %s587_s11, %s761_s11   ;;  %s538_s10 = sphi %s585_s10, %s760_s10   ;;  %s534_s9 = sphi %s583_s9, %s759_s9  }
   0x6   : > { %p25_p0 = scmp.ge.s32.totalorder %s24_s18, 4  ;;  %s27_s19 = sadd.s32 1, %s558_s15 }
   0x7   : > { %s62_s20 = sadd.s32 1, %s542_s11  ;;  %p69_p1 = scmp.ne.s32.totalorder %s542_s11, %s538_s10 }
   0x8   : > { %s767_s18 = smov (%p25_p0, %s24_s18), 0  ;;  %s769_s19 = smov (!%p25_p0, %s27_s19), %s558_s15 }
   0x9   : > { %s58_s21 = ssub.s32 %s554_s14, %s767_s18  ;;  %p70_p2 = scmp.eq.s32.totalorder %s562_s16, 0 }
   0xa   : > { %p29_p3 = scmp.ge.s32.totalorder %s769_s19, 2  ;;  %p75_p4 = scmp.ne.s32.totalorder %s538_s10, %s534_s9 }
   0xb   : > { %p634_p5 = por %p70_p2, %p69_p1  ;;  %p76_p6 = scmp.eq.s32.totalorder %s365_s17, 0 }
   0xc   : > { %s771_s19 = smov (%p29_p3, %s769_s19), 0  ;;  %p388_p8 = scmp.lt.s32.totalorder %s562_s16, 8 }
   0xd   : > { %p640_p7 = por %p76_p6, %p75_p4  ;;  %s57_s24 = ssub.s32 %s558_s15, %s771_s19 }
   0xe   : > { %s59_s25 = sor.u32 %s58_s21, %s57_s24  ;;  %s132_s26 = sand.u32 1, %s542_s11  }
   0xf   : > { %p60_p9 = scmp.eq.s32.totalorder %s59_s25, 0  ;;  %s369_s27 = sshll.u32 %s132_s26, 3 }
  0x10   : > { %s370_s28 = sshll.u32 %s558_s15, 2  ;;  %s136_s4 = scalar_lea.vmem [#allocation5], %s369_s27 }
  0x11   : > { %s650_s29 = scalar_select %p60_p9, %s542_s11, %s62_s20  }
  0x12   : > { %s141_s30 = sadd.s32 %s554_s14, %s370_s28  ;;  %s145_s5 = sshll.u32 %s136_s4, 4  ;;  %s658_s5 = int_to_ptr.vmem [resolvable:$true] %s145_s5 }
  0x13   : > { %s371_s3 = sshll.u32 %s141_s30, 7  ;;  %p664_p10 = pnand %p388_p8, %p634_p5 }
  0x14   : > { %s656_s8 = scalar_lea.hbm %s752_s1, %s371_s3  ;;  %s133_s17 = scalar_lea.sflag [#allocation6], %s132_s26 }
  0x15   : > { %s466_s20 = scalar_lea.hbm %s656_s8, 128  ;;  %p468_p0 = pneg %p664_p10 }
  0x16   : > { %p467_p13 = scmp.ne.s32.totalorder %s656_s8, %s466_s20  ;;  %s471_s24 = scalar_lea.hbm %s752_s1, 1024 }
  0x17   : > { %p472_p3 = scmp.lt.u32.totalorder %s656_s8, %s752_s1  ;;  %p473_p4 = scmp.lt.u32.totalorder %s471_s24, %s466_s20 }
  0x18   : > { %p469_p1 = pnand %p468_p0, %p467_p13  ;;  %p475_p6 = scmp.lt.u32.totalorder %s466_s20, %s656_s8 }
  0x19   : > { %p474_p5 = por %p473_p4, %p472_p3 }
  0x1a   : > { %p470_p2 = pneg %p469_p1 }
  0x1b   : > { %p476_p8 = por %p475_p6, %p474_p5 }
  0x1d   : > { %p477_p9 = pnand %p476_p8, %p470_p2 }
  0x1f   : > { %480 = shalt.err (!%p477_p9)
}
  0x20   : > { %s481_s26 = scalar_lea.vmem %s658_s5, 128  ;;  %s564_s28 = smov [#allocation5]  }
  0x21   : > { %p482_p13 = scmp.ne.s32.totalorder %s658_s5, %s481_s26  ;;  %s486_s30 = sshll.u32 %s564_s28, 4  ;;  %s487_s30 = int_to_ptr.vmem [resolvable:$false] %s486_s30 }
  0x22   : > { %s488_s3 = scalar_lea.vmem %s487_s30, 256  ;;  %p489_p12 = scmp.lt.s32.totalorder %s658_s5, %s487_s30 }
  0x23   : > { %p484_p1 = pnand %p482_p13, %p468_p0  ;;  %p490_p3 = scmp.lt.s32.totalorder %s488_s3, %s481_s26 }
  0x25   : > { %p485_p11 = pneg %p484_p1  ;;  %p491_p4 = por %p490_p3, %p489_p12 }
  0x27   : > { %p492_p5 = pnand %p491_p4, %p485_p11 }
  0x29   : > { %495 = shalt.err (!%p492_p5)
}
  0x2a   : > { %387 = dma.hbm_to_vmem [thread:$0]  (!%p664_p10), %s656_s8, 128, %s658_s5, %s133_s17  }
  0x2b   : > { %p757_p2 = scmp.lt.s32.totalorder %s562_s16, 9  ;;  %p758_p6 = scmp.ge.s32.totalorder %s562_s16, 1 }
  0x2d   : > { %p151_p0 = pnand %p758_p6, %p757_p2 }
  0x2e   : > { %s156_s4 = sand.u32 (!%p151_p0), 1, %s538_s10  }
  0x2f   : > { %154 = sbr.rel (%p151_p0) target bundleno = 828 (0x33c), region = 28  ;;  %s700_s6 = sshll.u32 (!%p151_p0), %s156_s4, 3 }
  0x30   : > { %s157_s7 = scalar_lea.sflag (!%p151_p0), [#allocation6], %s156_s4  ;;  %s160_s20 = scalar_lea.vmem (!%p151_p0), [#allocation5], %s700_s6 }
  0x36   : > { %529 = dma.done.wait (%p640_p7), %s157_s7, 128  }
  0x37   : > { %531 = vsyncadd (%p640_p7), %s157_s7, 4294967168  ;;  %p184_p10 = scmp.lt.s32.totalorder %s550_s13, 1  ;;  %p376_p11 = scmp.ne.s32.totalorder %s546_s12, 0 }
  0x38   : > { %vm196_vm0 = vcmask (!%p376_p11), 7168   ;;  %v565_v0 = vmov (!%p376_p11), -inf   ;;  %v566_v1 = vmov (!%p376_p11), 0.0  }
  0x39   : > { %s773_s13 = smov (!%p184_p10, %s550_s13), 1  ;;  %195 = sbr.rel (%p376_p11) target bundleno = 64 (0x40), region = 36 }
  0x3a   : > { %s374_s5 = sshll.u32 %s773_s13, 3  ;;  %197 = vst.msk [vmem:[#allocation2] sm:$0xff] (!%p376_p11), %vm196_vm0, %v565_v0  ;;  %198 = vst.msk [vmem:[#allocation3] sm:$0xff] (!%p376_p11), %vm196_vm0, %v566_v1 }
  0x3b   : > { %s187_s17 = scalar_lea.vmem %s751_s0, %s374_s5  ;;  %s715_s24 = scalar_lea.vmem %s753_s2, %s374_s5  ;;  %199 = vst.msk [vmem:[#allocation4] sm:$0xff] (!%p376_p11), %vm196_vm0, %v566_v1 }
  0x40 PF: > { %v201_v2 = vld [vmem:[%s187_s17] sm:$0xff]  ;;  %s377_s13 = sshll.u32 %s546_s12, 7  ;;  %v567_v3 = vmov 0   ;;  %v202_v6 = vlaneseq  ;;  %vm237_vm8 = vcmask 7168   ;;  %p379_p7 = scmp.ne.s32.totalorder %s546_s12, 3 }
  0x41   : > { %456 = vset.pattern.permute.xlu0 %v567_v3  ;;  %v205_v4 = vstv %s377_s13  ;;  %457 = vset.pattern.permute.xlu1 %v567_v3  ;;  %v200_v8 = vld [vmem:[%s160_s20] sm:$0xff]  ;;  %v248_v40 = vld [vmem:[#allocation3] sm:$0xff] }
  0x42   : > { %v206_v5 = vsub.s32 %v201_v2, %v205_v4  ;;  %v203_v7 = vand.u32 127, %v202_v6  ;;  %v235_v25 = vld [vmem:[#allocation4] sm:$0xff]  ;;  %v241_v30 = vld [vmem:[#allocation2] sm:$0xff] }
  0x44   : > { %211 = vperm.xlu0 %456, %v206_v5   ;;  %vm207_vm4 = vcmp.ge.s32.totalorder %v206_v5, 0  ;;  %vm208_vm5 = vcmp.lt.s32.totalorder %v206_v5, 128 }
  0x45   : > { %vm209_vm7 = vmand %vm207_vm4, %vm208_vm5 }
  0xc3   : > { %v212_v9 = vpop.permute.xlu0 %211 }
  0xc4   : > { %vm213_vm1 = vcmp.eq.s32.totalorder %v203_v7, %v212_v9 }
  0xc5   : > { %v214_v10 = vsel %vm213_vm1, %v200_v8, 0.0 }
  0xc6   : > { %215 = vadd.xlane.f32.xlu0 %v214_v10 }
 0x153   : > { %v216_v11 = vpop.xlane.xlu0 %215 }
 0x154   : > { %v378_v12 = vclamps-f32 %v216_v11, 0.999 }
 0x156   : > { %v220_v13 = vmul.f32 %v378_v12, %v378_v12  ;;  %v219_v21 = vmul.f32 0.87758255, %v378_v12  ;;  %vm232_vm6 = vcmp.lt.f32.partialorder %v378_v12, -0.87758255 }
 0x158   : > { %v221_v14 = vsub.f32 1.0, %v220_v13 }
 0x15a   : > { %v222_v15 = vmax.f32 %v221_v14, 0.0 }
 0x15c   : > { %458 = vrsqrt.f32 %v222_v15  ;;  %vm225_vm2 = vcmp.eq.f32.partialorder %v222_v15, inf  ;;  %v228_v18 = vand.u32 2147483648, %v222_v15  ;;  %vm227_vm3 = vcmp.eq.f32.partialorder %v222_v15, 0.0 }
 0x166   : > { %v459_v16 = vpop.eup %458 }
 0x167   : > { %v224_v17 = vmul.f32 %v459_v16, %v222_v15 }
 0x169   : > { %v226_v19 = vsel %vm225_vm2, %v222_v15, %v224_v17 }
 0x16a   : > { %v229_v20 = vsel %vm227_vm3, %v228_v18, %v226_v19 }
 0x16b   : > { %v230_v22 = vmul.f32 0.47942555, %v229_v20 }
 0x16d   : > { %v231_v23 = vsub.f32 %v219_v21, %v230_v22 }
 0x16f   : > { %v233_v24 = vsel %vm232_vm6, -1.0, %v231_v23 }
 0x170   : > { %v239_v26 = vsel %vm213_vm1, %v233_v24, %v200_v8  ;;  %v234_v27 = vmul.f32 64.0, %v233_v24 }
 0x171   : > { %v240_v28 = vmul.f32 64.0, %v239_v26 }
 0x172   : > { %v236_v29 = vsel %vm209_vm7, %v234_v27, %v235_v25 }
 0x173   : > { %242 = vmax.xlane.f32.xlu1 %v240_v28  ;;  %238 = vst.msk [vmem:[#allocation4] sm:$0xff] %vm237_vm8, %v236_v29 }
 0x17a   : > { %v272_v48 = vld [vmem:[#allocation4] sm:$0xff] (!%p379_p7) }
 0x200   : > { %v243_v31 = vpop.xlane.xlu1 %242 }
 0x201   : > { %v244_v32 = vmax.f32 %v241_v30, %v243_v31 }
 0x203   : > { %v245_v33 = vsub.f32 %v241_v30, %v244_v32  ;;  %262 = vst.msk [vmem:[#allocation2] sm:$0xff] %vm237_vm8, %v244_v32  ;;  %252 = vperm.xlu1 %457, %v244_v32  }
 0x205   : > { %v246_v38 = vmul.f32 1.442695, %v245_v33 }
 0x20a   : > { %v267_v46 = vld [vmem:[#allocation2] sm:$0xff] (!%p379_p7) }
 0x282   : > { %v253_v34 = vpop.permute.xlu1 %252 }
 0x283   : > { %v255_v35 = vsub.f32 %v240_v28, %v253_v34 }
 0x285   : > { %v256_v36 = vmul.f32 1.442695, %v255_v35 }
 0x287   : > { %460 = vpow2.f32 %v256_v36 }
 0x288   : > { %462 = vpow2.f32 %v246_v38 }
 0x291   : > { %v461_v37 = vpop.eup %460 }
 0x292   : > { %258 = vadd.xlane.f32.xlu1 %v461_v37  ;;  %v463_v39 = vpop.eup %462 }
 0x293   : > { %v249_v41 = vmul.f32 %v463_v39, %v248_v40 }
 0x31c   : > { %266 = sbr.rel (%p379_p7) target bundleno = 828 (0x33c), region = 40 }
 0x31f   : > { %v259_v42 = vpop.xlane.xlu1 %258 }
 0x320   : > { %v260_v43 = vadd.f32 %v259_v42, %v249_v41 }
 0x322   : > { %261 = vst.msk [vmem:[#allocation3] sm:$0xff] %vm237_vm8, %v260_v43 }
 0x329   : > { %v268_v44 = vld [vmem:[#allocation3] sm:$0xff] }
 0x32a   : > { %464 = vlog2.f32 %v268_v44 }
 0x334   : > { %v465_v45 = vpop.eup %464 }
 0x335   : > { %v270_v47 = vmul.f32 0.6931472, %v465_v45 }
 0x337   : > { %v271_v49 = vadd.f32 %v270_v47, %v267_v46 }
 0x339   : > { %v273_v50 = vsub.f32 %v271_v49, %v272_v48 }
 0x33b   : > { %274 = vst.msk [vmem:[%s715_s24] sm:$0xff] %vm237_vm8, %v273_v50 }
 0x33c PF: > { %s15_s16 = sadd.s32 1, %s562_s16   ;;  %s759_s9 = smov %s538_s10 }
 0x33d   : > { %p12_p12 = scmp.ge.s32.totalorder %s15_s16, 10   ;;  %s760_s10 = smov %s542_s11 }
 0x33e   : > { %s761_s11 = smov %s650_s29  ;;  %s762_s12 = smov %s554_s14 }
 0x33f   : > { %s763_s13 = smov %s558_s15  ;;  %s764_s14 = smov %s767_s18 }
 0x340   : > { %s765_s15 = smov %s771_s19  ;;  %14 = sbr.rel (!%p12_p12) target bundleno = 5 (0x5), region = 79 }
 0x347   :  { %294 = vsyncpa [#allocation6], 1 }
 0x348   :  { %296 = vsyncpa [#allocation6 + $0x1], 1 }

</bundles_post_ra>
